<compile_context>
chip_gen: v7x
topology: tpu7x:2x2x1
jax: 0.10.0
libtpu: 0.0.40
codegen_flags: <defaults>
</compile_context>

<pallas_src>
import jax
import jax.numpy as jnp
from jax import lax
from jax.experimental import pallas as pl
from jax.experimental.pallas import tpu as pltpu

# ----------------------- module-consistent config (small) -----------------------
NUM_BODY_JOINTS = 23                 # cfg.SMPL.NUM_BODY_JOINTS
NUM_JOINTS = NUM_BODY_JOINTS + 1     # 24
JOINT_REP_DIM = 6                    # '6d'
NPOSE = JOINT_REP_DIM * NUM_JOINTS   # 144
NUM_INPUT_FEATURES = 64              # cfg.MODEL.SMPL_HEAD.NUM_INPUT_FEATURES (kept small)
HIDDEN = 1024                        # hard-coded in fc1 / fc2
NBETAS = 10
NCAM = 3
N_ITER = 3

NSTATE_REAL = NPOSE + NBETAS + NCAM  # 157
STATE = 160                          # state width, padded (pad lanes provably stay 0)
NOUT_REAL = 9 * NUM_JOINTS + NBETAS + NCAM   # 229
OUT_W = 256                          # lane-dense output width


# ====================== fused kernel: folded IEF loop + rot6d->rotmat ======================
def _hmr_head_kernel(xf_ref, init_ref, a_ref, m_ref, c_ref, out_ref):
    f32 = jnp.float32
    bf16 = jnp.bfloat16
    Bt = xf_ref.shape[0]
    J = NUM_JOINTS

    # Loop-invariant drive term: xf -> fc1 -> fc2 -> dec, all pre-folded into A.
    base = jnp.dot(xf_ref[...], a_ref[...], preferred_element_type=f32) + c_ref[...]  # (Bt, STATE)

    # IEF state: [pose(144, component-major) | betas(10) | cam(3) | pad(3)=0]
    s = jnp.broadcast_to(init_ref[...], (Bt, STATE)).astype(f32)

    for _ in range(N_ITER):
        # s_{k+1} = s_k + (xf@A + c) + s_k @ M      (drop1/drop2 identity at eval)
        s = s + base + jnp.dot(s.astype(bf16), m_ref[...], preferred_element_type=f32)

    # -------- rot6d -> rotmat on component-major (Bt, 24) slabs --------
    a1x = s[:, 0 * J:1 * J]; a1y = s[:, 1 * J:2 * J]; a1z = s[:, 2 * J:3 * J]
    a2x = s[:, 3 * J:4 * J]; a2y = s[:, 4 * J:5 * J]; a2z = s[:, 5 * J:6 * J]
    eps2 = f32(1e-24)        # (1e-12)^2 : rsqrt(max(ss, eps^2)) == 1/max(norm, eps)

    inv_n1 = lax.rsqrt(jnp.maximum(a1x * a1x + a1y * a1y + a1z * a1z, eps2))  # EUP
    b1x, b1y, b1z = a1x * inv_n1, a1y * inv_n1, a1z * inv_n1

    d = b1x * a2x + b1y * a2y + b1z * a2z
    ux, uy, uz = a2x - d * b1x, a2y - d * b1y, a2z - d * b1z
    inv_n2 = lax.rsqrt(jnp.maximum(ux * ux + uy * uy + uz * uz, eps2))        # EUP
    b2x, b2y, b2z = ux * inv_n2, uy * inv_n2, uz * inv_n2

    b3x = b1y * b2z - b1z * b2y
    b3y = b1z * b2x - b1x * b2z
    b3z = b1x * b2y - b1y * b2x

    # Single lane-dense store: [R row-major (9 x 24) | betas(10) | cam(3) | pad(27)]
    out_ref[...] = jnp.concatenate(
        [b1x, b2x, b3x, b1y, b2y, b3y, b1z, b2z, b3z,        # R00,R01,R02,R10,...,R22
         s[:, 6 * J:6 * J + NBETAS + NCAM],
         jnp.zeros((Bt, OUT_W - NOUT_REAL), f32)],
        axis=-1)


# ============================ parameter packing (one-time) ============================
def _pose_perm():
    # new index q = c*24 + j  <-  old index p = 6*j + c   (component-major re-layout)
    return (6 * jnp.arange(NUM_JOINTS)[None, :] + jnp.arange(6)[:, None]).reshape(-1)


def pack_params(p):
    """Permute / pad / pre-fold module parameters into kernel layout (done once, f32)."""
    perm = _pose_perm()
    f32 = jnp.float32
    bf16 = jnp.bfloat16
    pad = STATE - NSTATE_REAL   # 3

    # fused decoder weight cols: [pose(144, component-major) | betas(10) | cam(3) | pad=0]
    wdec = jnp.concatenate(
        [p["wp"].astype(f32)[:, perm], p["ws"].astype(f32), p["wc"].astype(f32),
         jnp.zeros((HIDDEN, pad), f32)], axis=1)                             # (1024, STATE)
    bdec = jnp.concatenate(
        [p["bp"].astype(f32)[:, perm], p["bs"].astype(f32), p["bc"].astype(f32),
         jnp.zeros((1, pad), f32)], axis=1)                                  # (1, STATE)

    # fc1 weight rows: [xf(C) | pose(144) | betas(10) | cam(3)]
    w1 = p["w1"].astype(f32)
    w1f = w1[:NUM_INPUT_FEATURES]                                            # (C, 1024)
    w1p = w1[NUM_INPUT_FEATURES:NUM_INPUT_FEATURES + NPOSE][perm, :]
    w1b = w1[NUM_INPUT_FEATURES + NPOSE:NUM_INPUT_FEATURES + NPOSE + NBETAS]
    w1c = w1[NUM_INPUT_FEATURES + NPOSE + NBETAS:]
    w1s = jnp.concatenate([w1p, w1b, w1c, jnp.zeros((pad, HIDDEN), f32)], axis=0)  # (STATE, 1024)

    # -------- affine pre-fold (f32): fc1 -> fc2 -> dec composed offline --------
    w2 = p["w2"].astype(f32)
    w2dec = w2 @ wdec                                                        # (1024, STATE)
    A = w1f @ w2dec                                                          # (C, STATE)
    M = w1s @ w2dec                                                          # (STATE, STATE)
    c = (p["b1"].astype(f32) @ w2 + p["b2"].astype(f32)) @ wdec + bdec       # (1, STATE)
    # pad lanes of A/M cols, c and init are exactly 0 -> state pad lanes stay 0.

    init_state = jnp.concatenate(
        [p["init_body_pose"][:, perm], p["init_betas"], p["init_cam"],
         jnp.zeros((1, pad), f32)], axis=1)                                  # (1, STATE)

    return dict(init_state=init_state.astype(f32),
                A=A.astype(bf16), M=M.astype(bf16), c=c.astype(f32))


# ================================ wrapper (glue) ==================================
def hmr_decoder_head_forward(features_nchw, packed, *, block_b=256):
    B, C, H, W = features_nchw.shape

    # AdaptiveAvgPool2d(1) done in the wrapper (tiny XLA reduce); kernel only ever
    # sees the pooled bf16 (B, C) vector -> minimal activation DMA.
    xf = jnp.mean(features_nchw.astype(jnp.float32), axis=(2, 3)).astype(jnp.bfloat16)

    bt = min(block_b, B)                      # batch tile (>=128/256 at production B)
    grid = (pl.cdiv(B, bt),)

    out = pl.pallas_call(
        _hmr_head_kernel,
        out_shape=jax.ShapeDtypeStruct((B, OUT_W), jnp.float32),
        grid_spec=pltpu.PrefetchScalarGridSpec(
            num_scalar_prefetch=0,
            grid=grid,
            in_specs=[
                pl.BlockSpec((bt, C), lambda i: (i, 0)),            # xf tile (pipelined)
                pl.BlockSpec((1, STATE), lambda i: (0, 0)),         # init state (resident)
                pl.BlockSpec((C, STATE), lambda i: (0, 0)),         # A  (resident)
                pl.BlockSpec((STATE, STATE), lambda i: (0, 0)),     # M  (resident)
                pl.BlockSpec((1, STATE), lambda i: (0, 0)),         # c  (resident)
            ],
            out_specs=pl.BlockSpec((bt, OUT_W), lambda i: (i, 0)),
        ),
        compiler_params=pltpu.CompilerParams(
            dimension_semantics=("parallel",),          # megacore / v7x dual-TC split
            vmem_limit_bytes=48 * 1024 * 1024,          # explicit; fits v7x 64 MiB VMEM
        ),
    )(xf, packed["init_state"], packed["A"], packed["M"], packed["c"])

    # Slice the lane-dense output apart (layout plumbing only).
    rot = (out[:, :9 * NUM_JOINTS]
           .reshape(B, 9, NUM_JOINTS)       # [b, R-row-major-index, joint]
           .transpose(0, 2, 1)
           .reshape(B, NUM_JOINTS, 3, 3))
    betas = out[:, 9 * NUM_JOINTS:9 * NUM_JOINTS + NBETAS]
    cam = out[:, 9 * NUM_JOINTS + NBETAS:9 * NUM_JOINTS + NBETAS + NCAM]

    pred_smpl_params = {
        "global_orient": rot[:, 0:1],
        "body_pose": rot[:, 1:],
        "betas": betas,
    }
    return pred_smpl_params, cam, []


# ============================ deterministic parameters ============================
def init_params(key):
    ks = jax.random.split(key, 12)
    din = NUM_INPUT_FEATURES + NPOSE + 13    # nn.Linear(num_input_features + npose + 13, 1024)

    def linear(kw, kb, fan_in, fan_out, gain=None):
        if gain is None:                     # default nn.Linear init (uniform +-1/sqrt(fan_in))
            bound = 1.0 / (fan_in ** 0.5)
            w = jax.random.uniform(kw, (fan_in, fan_out), jnp.float32, -bound, bound)
        else:                                # xavier_uniform_ with gain (INIT_DECODER_XAVIER)
            bound = gain * (6.0 / (fan_in + fan_out)) ** 0.5
            w = jax.random.uniform(kw, (fan_in, fan_out), jnp.float32, -bound, bound)
        bbound = 1.0 / (fan_in ** 0.5)
        b = jax.random.uniform(kb, (1, fan_out), jnp.float32, -bbound, bbound)
        return w, b

    w1, b1 = linear(ks[0], ks[1], din, HIDDEN)
    w2, b2 = linear(ks[2], ks[3], HIDDEN, HIDDEN)
    wp, bp = linear(ks[4], ks[5], HIDDEN, NPOSE, gain=0.01)
    ws, bs = linear(ks[6], ks[7], HIDDEN, NBETAS, gain=0.01)
    wc, bc = linear(ks[8], ks[9], HIDDEN, NCAM, gain=0.01)

    # synthetic SMPL mean params (normally from data/smpl_mean_params.npz)
    init_body_pose = jnp.tile(jnp.array([[1., 0., 0., 0., 1., 0.]], jnp.float32), (1, NUM_JOINTS))
    init_body_pose = init_body_pose + 0.05 * jax.random.normal(ks[10], (1, NPOSE), jnp.float32)
    init_betas = 0.1 * jax.random.normal(ks[11], (1, NBETAS), jnp.float32)
    init_cam = jnp.array([[0.9, 0.0, 0.0]], jnp.float32)

    return dict(w1=w1, b1=b1, w2=w2, b2=b2, wp=wp, bp=bp, ws=ws, bs=bs, wc=wc, bc=bc,
                init_body_pose=init_body_pose, init_betas=init_betas, init_cam=init_cam)


# ============================ pure-JAX reference check ============================
def reference_forward(features_nchw, p, n_iter=N_ITER):
    B = features_nchw.shape[0]
    xf = jnp.mean(features_nchw.astype(jnp.float32), axis=(2, 3))
    pose = jnp.broadcast_to(p["init_body_pose"], (B, NPOSE))
    betas = jnp.broadcast_to(p["init_betas"], (B, NBETAS))
    cam = jnp.broadcast_to(p["init_cam"], (B, NCAM))
    for _ in range(n_iter):
        xc = jnp.concatenate([xf, pose, betas, cam], axis=1)
        xc = xc @ p["w1"] + p["b1"]
        xc = xc @ p["w2"] + p["b2"]
        pose = pose + xc @ p["wp"] + p["bp"]
        betas = betas + xc @ p["ws"] + p["bs"]
        cam = cam + xc @ p["wc"] + p["bc"]
    x = pose.reshape(-1, 2, 3).transpose(0, 2, 1)
    a1, a2 = x[:, :, 0], x[:, :, 1]
    b1 = a1 / jnp.maximum(jnp.linalg.norm(a1, axis=1, keepdims=True), 1e-12)
    u = a2 - jnp.sum(b1 * a2, axis=1, keepdims=True) * b1
    b2 = u / jnp.maximum(jnp.linalg.norm(u, axis=1, keepdims=True), 1e-12)
    b3 = jnp.cross(b1, b2)
    rot = jnp.stack([b1, b2, b3], axis=-1).reshape(B, NUM_JOINTS, 3, 3)
    return rot, betas, cam


if __name__ == "__main__":
    key = jax.random.PRNGKey(0)
    kf, kp = jax.random.split(key)
    B, C, H, W = 2, NUM_INPUT_FEATURES, 8, 8
    features = jax.random.normal(kf, (B, C, H, W), jnp.float32)
    params = init_params(kp)
    packed = pack_params(params)

    out = jax.block_until_ready(hmr_decoder_head_forward(features, packed))
    pred_smpl_params, pred_cam, _ = out

    rot = jnp.concatenate([pred_smpl_params["global_orient"], pred_smpl_params["body_pose"]], axis=1)
    assert rot.shape == (B, NUM_JOINTS, 3, 3)
    assert pred_smpl_params["betas"].shape == (B, NBETAS)
    assert pred_cam.shape == (B, NCAM)
    assert bool(jnp.all(jnp.isfinite(rot)))

    rot_ref, betas_ref, cam_ref = reference_forward(features, params)
    assert jnp.allclose(rot, rot_ref, atol=2e-2, rtol=2e-2)
    assert jnp.allclose(pred_smpl_params["betas"], betas_ref, atol=2e-2, rtol=2e-2)
    assert jnp.allclose(pred_cam, cam_ref, atol=2e-2, rtol=2e-2)

    print("KERNEL_OK")
</pallas_src>

<mosaic_0001>
module attributes {stable_mosaic.version = 11 : i64} {
  func.func @_hmr_head_kernel(%arg0: i32, %arg1: memref<2x64xbf16, #tpu.memory_space<vmem>>, %arg2: memref<1x160xf32, #tpu.memory_space<vmem>>, %arg3: memref<64x160xbf16, #tpu.memory_space<vmem>>, %arg4: memref<160x160xbf16, #tpu.memory_space<vmem>>, %arg5: memref<1x160xf32, #tpu.memory_space<vmem>>, %arg6: memref<2x256xf32, #tpu.memory_space<vmem>>) attributes {dimension_semantics = [#tpu.dimension_semantics<parallel>], iteration_bounds = array<i64: 1>, scalar_prefetch = 0 : i64, scratch_operands = 0 : i64, tpu.core_type = #tpu.core_type<tc>, window_params = [{transform_indices = @transform_0, window_bounds = array<i64: 2, 64>}, {pipeline_mode = #tpu.pipeline_mode<synchronous>, transform_indices = @transform_1, window_bounds = array<i64: 1, 160>}, {pipeline_mode = #tpu.pipeline_mode<synchronous>, transform_indices = @transform_2, window_bounds = array<i64: 64, 160>}, {pipeline_mode = #tpu.pipeline_mode<synchronous>, transform_indices = @transform_3, window_bounds = array<i64: 160, 160>}, {pipeline_mode = #tpu.pipeline_mode<synchronous>, transform_indices = @transform_4, window_bounds = array<i64: 1, 160>}, {transform_indices = @transform_5, window_bounds = array<i64: 2, 256>}]} {
    %c0 = arith.constant 0 : index
    %c0_0 = arith.constant 0 : index
    %0 = vector.load %arg1[%c0, %c0_0] : memref<2x64xbf16, #tpu.memory_space<vmem>>, vector<2x64xbf16>
    %c0_1 = arith.constant 0 : index
    %c0_2 = arith.constant 0 : index
    %1 = vector.load %arg3[%c0_1, %c0_2] : memref<64x160xbf16, #tpu.memory_space<vmem>>, vector<64x160xbf16>
    %cst = arith.constant dense<0.000000e+00> : vector<2x160xf32>
    %2 = tpu.matmul %0, %1, %cst {dimension_numbers = #tpu.dot_dimension_numbers<[1], [0], [0], [1], [0, 0, 1, 1], [], []>} : vector<2x64xbf16>, vector<64x160xbf16>, vector<2x160xf32> -> vector<2x160xf32>
    %c0_3 = arith.constant 0 : index
    %c0_4 = arith.constant 0 : index
    %3 = vector.load %arg5[%c0_3, %c0_4] : memref<1x160xf32, #tpu.memory_space<vmem>>, vector<1x160xf32>
    %4 = vector.broadcast %3 : vector<1x160xf32> to vector<2x160xf32>
    %5 = arith.addf %2, %4 : vector<2x160xf32>
    %c0_5 = arith.constant 0 : index
    %c0_6 = arith.constant 0 : index
    %6 = vector.load %arg2[%c0_5, %c0_6] : memref<1x160xf32, #tpu.memory_space<vmem>>, vector<1x160xf32>
    %7 = vector.shape_cast %6 : vector<1x160xf32> to vector<1x160xf32>
    %8 = vector.broadcast %7 : vector<1x160xf32> to vector<2x160xf32>
    %9 = arith.addf %8, %5 : vector<2x160xf32>
    %10 = arith.truncf %8 : vector<2x160xf32> to vector<2x160xbf16>
    %c0_7 = arith.constant 0 : index
    %c0_8 = arith.constant 0 : index
    %11 = vector.load %arg4[%c0_7, %c0_8] : memref<160x160xbf16, #tpu.memory_space<vmem>>, vector<160x160xbf16>
    %cst_9 = arith.constant dense<0.000000e+00> : vector<2x160xf32>
    %12 = tpu.matmul %10, %11, %cst_9 {dimension_numbers = #tpu.dot_dimension_numbers<[1], [0], [0], [1], [0, 0, 1, 1], [], []>} : vector<2x160xbf16>, vector<160x160xbf16>, vector<2x160xf32> -> vector<2x160xf32>
    %13 = arith.addf %9, %12 : vector<2x160xf32>
    %14 = arith.addf %13, %5 : vector<2x160xf32>
    %15 = arith.truncf %13 : vector<2x160xf32> to vector<2x160xbf16>
    %c0_10 = arith.constant 0 : index
    %c0_11 = arith.constant 0 : index
    %16 = vector.load %arg4[%c0_10, %c0_11] : memref<160x160xbf16, #tpu.memory_space<vmem>>, vector<160x160xbf16>
    %cst_12 = arith.constant dense<0.000000e+00> : vector<2x160xf32>
    %17 = tpu.matmul %15, %16, %cst_12 {dimension_numbers = #tpu.dot_dimension_numbers<[1], [0], [0], [1], [0, 0, 1, 1], [], []>} : vector<2x160xbf16>, vector<160x160xbf16>, vector<2x160xf32> -> vector<2x160xf32>
    %18 = arith.addf %14, %17 : vector<2x160xf32>
    %19 = arith.addf %18, %5 : vector<2x160xf32>
    %20 = arith.truncf %18 : vector<2x160xf32> to vector<2x160xbf16>
    %c0_13 = arith.constant 0 : index
    %c0_14 = arith.constant 0 : index
    %21 = vector.load %arg4[%c0_13, %c0_14] : memref<160x160xbf16, #tpu.memory_space<vmem>>, vector<160x160xbf16>
    %cst_15 = arith.constant dense<0.000000e+00> : vector<2x160xf32>
    %22 = tpu.matmul %20, %21, %cst_15 {dimension_numbers = #tpu.dot_dimension_numbers<[1], [0], [0], [1], [0, 0, 1, 1], [], []>} : vector<2x160xbf16>, vector<160x160xbf16>, vector<2x160xf32> -> vector<2x160xf32>
    %23 = arith.addf %19, %22 : vector<2x160xf32>
    %24 = vector.extract_strided_slice %23 {offsets = [0, 0], sizes = [2, 24], strides = [1, 1]} : vector<2x160xf32> to vector<2x24xf32>
    %25 = vector.extract_strided_slice %23 {offsets = [0, 24], sizes = [2, 24], strides = [1, 1]} : vector<2x160xf32> to vector<2x24xf32>
    %26 = vector.extract_strided_slice %23 {offsets = [0, 48], sizes = [2, 24], strides = [1, 1]} : vector<2x160xf32> to vector<2x24xf32>
    %27 = vector.extract_strided_slice %23 {offsets = [0, 72], sizes = [2, 24], strides = [1, 1]} : vector<2x160xf32> to vector<2x24xf32>
    %28 = vector.extract_strided_slice %23 {offsets = [0, 96], sizes = [2, 24], strides = [1, 1]} : vector<2x160xf32> to vector<2x24xf32>
    %29 = vector.extract_strided_slice %23 {offsets = [0, 120], sizes = [2, 24], strides = [1, 1]} : vector<2x160xf32> to vector<2x24xf32>
    %30 = arith.mulf %24, %24 : vector<2x24xf32>
    %31 = arith.mulf %25, %25 : vector<2x24xf32>
    %32 = arith.addf %30, %31 : vector<2x24xf32>
    %33 = arith.mulf %26, %26 : vector<2x24xf32>
    %34 = arith.addf %32, %33 : vector<2x24xf32>
    %cst_16 = arith.constant 1.000000e-24 : f32
    %35 = vector.broadcast %cst_16 : f32 to vector<2x24xf32>
    %36 = arith.maximumf %34, %35 : vector<2x24xf32>
    %37 = math.rsqrt %36 : vector<2x24xf32>
    %38 = arith.mulf %24, %37 : vector<2x24xf32>
    %39 = arith.mulf %25, %37 : vector<2x24xf32>
    %40 = arith.mulf %26, %37 : vector<2x24xf32>
    %41 = arith.mulf %38, %27 : vector<2x24xf32>
    %42 = arith.mulf %39, %28 : vector<2x24xf32>
    %43 = arith.addf %41, %42 : vector<2x24xf32>
    %44 = arith.mulf %40, %29 : vector<2x24xf32>
    %45 = arith.addf %43, %44 : vector<2x24xf32>
    %46 = arith.mulf %45, %38 : vector<2x24xf32>
    %47 = arith.subf %27, %46 : vector<2x24xf32>
    %48 = arith.mulf %45, %39 : vector<2x24xf32>
    %49 = arith.subf %28, %48 : vector<2x24xf32>
    %50 = arith.mulf %45, %40 : vector<2x24xf32>
    %51 = arith.subf %29, %50 : vector<2x24xf32>
    %52 = arith.mulf %47, %47 : vector<2x24xf32>
    %53 = arith.mulf %49, %49 : vector<2x24xf32>
    %54 = arith.addf %52, %53 : vector<2x24xf32>
    %55 = arith.mulf %51, %51 : vector<2x24xf32>
    %56 = arith.addf %54, %55 : vector<2x24xf32>
    %cst_17 = arith.constant 1.000000e-24 : f32
    %57 = vector.broadcast %cst_17 : f32 to vector<2x24xf32>
    %58 = arith.maximumf %56, %57 : vector<2x24xf32>
    %59 = math.rsqrt %58 : vector<2x24xf32>
    %60 = arith.mulf %47, %59 : vector<2x24xf32>
    %61 = arith.mulf %49, %59 : vector<2x24xf32>
    %62 = arith.mulf %51, %59 : vector<2x24xf32>
    %63 = arith.mulf %39, %62 : vector<2x24xf32>
    %64 = arith.mulf %40, %61 : vector<2x24xf32>
    %65 = arith.subf %63, %64 : vector<2x24xf32>
    %66 = arith.mulf %40, %60 : vector<2x24xf32>
    %67 = arith.mulf %38, %62 : vector<2x24xf32>
    %68 = arith.subf %66, %67 : vector<2x24xf32>
    %69 = arith.mulf %38, %61 : vector<2x24xf32>
    %70 = arith.mulf %39, %60 : vector<2x24xf32>
    %71 = arith.subf %69, %70 : vector<2x24xf32>
    %72 = vector.extract_strided_slice %23 {offsets = [0, 144], sizes = [2, 13], strides = [1, 1]} : vector<2x160xf32> to vector<2x13xf32>
    %cst_18 = arith.constant 0.000000e+00 : f32
    %73 = vector.broadcast %cst_18 : f32 to vector<2x27xf32>
    %74 = tpu.concatenate %38, %60, %65, %39, %61, %68, %40, %62, %71, %72, %73 in 1 : vector<2x24xf32>, vector<2x24xf32>, vector<2x24xf32>, vector<2x24xf32>, vector<2x24xf32>, vector<2x24xf32>, vector<2x24xf32>, vector<2x24xf32>, vector<2x24xf32>, vector<2x13xf32>, vector<2x27xf32> -> vector<2x256xf32>
    %c0_19 = arith.constant 0 : index
    %c0_20 = arith.constant 0 : index
    %75 = vector.load %arg6[%c0_19, %c0_20] : memref<2x256xf32, #tpu.memory_space<vmem>>, vector<2x256xf32>
    tpu.vector_store %arg6[%c0_19, %c0_20], %74 {strides = array<i32>} : memref<2x256xf32, #tpu.memory_space<vmem>>, vector<2x256xf32>,
    return
  }
  func.func @transform_0(%arg0: i32) -> (i32, i32) {
    %c0_i32 = arith.constant 0 : i32
    %c0_i32_0 = arith.constant 0 : i32
    return %arg0, %c0_i32 : i32, i32
  }
  func.func @transform_1(%arg0: i32) -> (i32, i32) {
    %c0_i32 = arith.constant 0 : i32
    %c0_i32_0 = arith.constant 0 : i32
    %c0_i32_1 = arith.constant 0 : i32
    return %c0_i32, %c0_i32_0 : i32, i32
  }
  func.func @transform_2(%arg0: i32) -> (i32, i32) {
    %c0_i32 = arith.constant 0 : i32
    %c0_i32_0 = arith.constant 0 : i32
    %c0_i32_1 = arith.constant 0 : i32
    return %c0_i32, %c0_i32_0 : i32, i32
  }
  func.func @transform_3(%arg0: i32) -> (i32, i32) {
    %c0_i32 = arith.constant 0 : i32
    %c0_i32_0 = arith.constant 0 : i32
    %c0_i32_1 = arith.constant 0 : i32
    return %c0_i32, %c0_i32_0 : i32, i32
  }
  func.func @transform_4(%arg0: i32) -> (i32, i32) {
    %c0_i32 = arith.constant 0 : i32
    %c0_i32_0 = arith.constant 0 : i32
    %c0_i32_1 = arith.constant 0 : i32
    return %c0_i32, %c0_i32_0 : i32, i32
  }
  func.func @transform_5(%arg0: i32) -> (i32, i32) {
    %c0_i32 = arith.constant 0 : i32
    %c0_i32_0 = arith.constant 0 : i32
    return %arg0, %c0_i32 : i32, i32
  }
}

</mosaic_0001>

<bundles_post_ra>
// kernel: tpu_custom_call.1
= control target key start
LH: loop header
LB: loop body
LE: loop exit
PB: predicated region body
PF: predicated region fallthrough
CT: control target
= control target key end

     0   :  { %10 = vsyncpa [#allocation3], 0  ;;  %s1126_s0 = inlined_call_operand.hbm [shape: bf16[2,64], index: 0, kind: input, shape index: {}]   ;;  %s1127_s1 = inlined_call_operand.vmem [shape: f32[1,160], index: 1, kind: input, shape index: {}]   ;;  %s1128_s2 = inlined_call_operand.hbm [shape: bf16[64,160], index: 2, kind: input, shape index: {}]   ;;  %s1129_s3 = inlined_call_operand.hbm [shape: bf16[160,160], index: 3, kind: input, shape index: {}]   ;;  %s1130_s4 = inlined_call_operand.vmem [shape: f32[1,160], index: 4, kind: input, shape index: {}]   ;;  %s1131_s5 = inlined_call_operand.hbm [shape: f32[2,256], index: 5, kind: output, shape index: {}]  }
   0x1   :  { %11 = vsyncpa [#allocation6], 0 }
   0x2   :  { %12 = vsyncpa [#allocation4], 0  ;;  %s868_s18 = smov [#allocation5]   ;;  %s774_s22 = scalar_lea.hbm %s1128_s2, 1024 }
   0x3   :  { %s30_s19 = sshll.u32 %s868_s18, 4  ;;  %p775_p0 = scmp.ne.s32.totalorder %s1128_s2, %s774_s22  ;;  %s31_s19 = int_to_ptr.vmem [resolvable:$true] %s30_s19 }
   0x4   :  { %p778_p1 = scmp.lt.u32.totalorder %s774_s22, %s1128_s2 }
   0x6   :  { %p780_p2 = pnand %p778_p1, %p775_p0 }
   0x8   :  { %783 = shalt.err (!%p780_p2)
}
   0x9   :  { %s784_s27 = scalar_lea.vmem %s31_s19, 1024  ;;  %p789_p4 = scmp.lt.s32.totalorder %s31_s19, %s31_s19 }
   0xa   :  { %p785_p3 = scmp.ne.s32.totalorder %s31_s19, %s784_s27  ;;  %p790_p5 = scmp.lt.s32.totalorder %s784_s27, %s784_s27 }
   0xc   :  { %p791_p6 = por %p790_p5, %p789_p4 }
   0xe   :  { %p792_p7 = pnand %p791_p6, %p785_p3 }
  0x10   :  { %795 = shalt.err (!%p792_p7)
}
  0x11   :  { %s869_s28 = smov 128   ;;  %s870_s29 = smov 8  }
  0x12   :  { %36 = dma.hbm_to_vmem [thread:$0]  %s1128_s2, 1024, %s31_s19, [#allocation6], %s869_s28, %s869_s28, %s870_s29  }
  0x13   :  { %s871_s7 = smov [#allocation2]   ;;  %s872_s9 = smov [#allocation7]  }
  0x14   :  { %s19_s8 = sshll.u32 %s871_s7, 4  ;;  %s42_s10 = sshll.u32 %s872_s9, 4  ;;  %s20_s8 = int_to_ptr.vmem [resolvable:$true] %s19_s8  ;;  %s43_s10 = int_to_ptr.vmem [resolvable:$true] %s42_s10 }
  0x15   :  { %s796_s13 = scalar_lea.hbm %s1126_s0, 16 }
  0x16   :  { %p797_p8 = scmp.ne.s32.totalorder %s1126_s0, %s796_s13  ;;  %p800_p9 = scmp.lt.u32.totalorder %s796_s13, %s1126_s0 }
  0x18   :  { %p802_p10 = pnand %p800_p9, %p797_p8 }
  0x1a   :  { %805 = shalt.err (!%p802_p10)
}
  0x1b   :  { %s806_s2 = scalar_lea.vmem %s20_s8, 16  ;;  %s810_s18 = scalar_lea.vmem %s20_s8, 32 }
  0x1c   :  { %p807_p11 = scmp.ne.s32.totalorder %s20_s8, %s806_s2  ;;  %p811_p12 = scmp.lt.s32.totalorder %s20_s8, %s20_s8 }
  0x1d   :  { %p812_p13 = scmp.lt.s32.totalorder %s810_s18, %s806_s2 }
  0x1f   :  { %p813_p0 = por %p812_p13, %p811_p12 }
  0x21   :  { %p814_p1 = pnand %p813_p0, %p807_p11 }
  0x23   :  { %817 = shalt.err (!%p814_p1)
}
  0x24   :  { %22 = dma.hbm_to_vmem [thread:$0]  %s1126_s0, 16, %s20_s8, [#allocation3]  }
  0x25   :  { %s818_s23 = scalar_lea.hbm %s1129_s3, 2560 }
  0x26   :  { %p819_p2 = scmp.ne.s32.totalorder %s1129_s3, %s818_s23  ;;  %p822_p3 = scmp.lt.u32.totalorder %s818_s23, %s1129_s3 }
  0x28   :  { %p824_p4 = pnand %p822_p3, %p819_p2 }
  0x2a   :  { %827 = shalt.err (!%p824_p4)
}
  0x2b   :  { %s828_s30 = scalar_lea.vmem %s43_s10, 2560  ;;  %p833_p6 = scmp.lt.s32.totalorder %s43_s10, %s43_s10 }
  0x2c   :  { %p829_p5 = scmp.ne.s32.totalorder %s43_s10, %s828_s30  ;;  %p834_p7 = scmp.lt.s32.totalorder %s828_s30, %s828_s30 }
  0x2e   :  { %p835_p8 = por %p834_p7, %p833_p6 }
  0x30   :  { %p836_p9 = pnand %p835_p8, %p829_p5 }
  0x32   :  { %839 = shalt.err (!%p836_p9)
}
  0x33   :  { %48 = dma.hbm_to_vmem [thread:$0]  %s1129_s3, 2560, %s43_s10, [#allocation6], %s869_s28, %s869_s28, %s870_s29  }
  0x34   :  { %862 = dma.done.wait [#allocation3], 16  }
  0x35   :  { %863 = vsyncadd [#allocation3], 4294967280 }
  0x36   :  { %864 = dma.done.wait [#allocation6], 3584  }
  0x37   :  { %865 = vsyncadd [#allocation6], 4294963712  ;;  %v873_v0 = vmov 0   ;;  %v957_v1 = vld [vmem:[#allocation7 + $0x4] ss:$8 sps:$4 sm:$0xff]   ;;  %v72_v10 = vlaneseq  ;;  %vm303_vm0 = vcmask 261120  }
  0x38   :  { %158 = vmatprep.mubr.bf16.mxu0 %v873_v0  ;;  %v959_v2 = vld [vmem:[#allocation7] ss:$8 sps:$4 sm:$0xff]   ;;  %307 = vmatprep.subr.bf16.mxu1 %v957_v1  ;;  %v962_v3 = vld [vmem:[#allocation7 + $0x14] ss:$8 sps:$4 sm:$0xff]   ;;  %v965_v4 = vld [vmem:[#allocation7 + $0x10] ss:$8 sps:$4 sm:$0xff]  }
  0x39   :  { %308 = vmatpush1.bf16.msra.mxu1 %v959_v2  ;;  %v968_v5 = vld [vmem:[#allocation7 + $0x24] ss:$8 sps:$4 sm:$0xff]   ;;  %v971_v6 = vld [vmem:[#allocation7 + $0x20] ss:$8 sps:$4 sm:$0xff]   ;;  %v974_v9 = vld [vmem:[#allocation7 + $0x34] ss:$8 sps:$4 sm:$0xff]  }
  0x3a   :  { %309 = vmatprep.subr.bf16.mxu1 %v962_v3  ;;  %v742_v7 = vld [vmem:[#allocation5 + $0x4] ss:$8 sps:$4 sm:$0xff]   ;;  %v745_v8 = vld [vmem:[#allocation5] ss:$8 sps:$4 sm:$0xff]   ;;  %v748_v11 = vld [vmem:[#allocation5 + $0x14] ss:$8 sps:$4 sm:$0xff]  }
  0x3b   :  { %126 = vmatprep.subr.bf16.mxu0 %v742_v7  ;;  %v751_v12 = vld [vmem:[#allocation5 + $0x10] ss:$8 sps:$4 sm:$0xff]   ;;  %v980_v14 = vld [vmem:[#allocation7 + $0x44] ss:$8 sps:$4 sm:$0xff]   ;;  %v982_v16 = vshrl.u32 %v72_v10, 7  ;;  %vm122_vm1 = vcmask 523264  }
  0x3c   :  { %127 = vmatpush1.bf16.msra.mxu0 %v745_v8  ;;  %v977_v13 = vld [vmem:[#allocation7 + $0x30] ss:$8 sps:$4 sm:$0xff]   ;;  %v754_v15 = vld [vmem:[#allocation5 + $0x24] ss:$8 sps:$4 sm:$0xff]   ;;  %v757_v17 = vld [vmem:[#allocation5 + $0x20] ss:$8 sps:$4 sm:$0xff]  }
  0x3d   :  { %310 = vmatpush1.bf16.msra.mxu1 %v965_v4  ;;  %128 = vmatprep.subr.bf16.mxu0 %v748_v11  ;;  %v985_v18 = vld [vmem:[#allocation7 + $0x40] ss:$8 sps:$4 sm:$0xff]   ;;  %v760_v19 = vld [vmem:[#allocation5 + $0x34] ss:$8 sps:$4 sm:$0xff]   ;;  %v78_v21 = vsub.s32 1, %v982_v16  ;;  %v74_v33 = vsub.s32 0, %v982_v16 }
  0x3e   :  { %311 = vmatprep.subr.bf16.mxu1 %v968_v5  ;;  %v988_v20 = vld [vmem:[#allocation7 + $0x54] ss:$8 sps:$4 sm:$0xff]   ;;  %v763_v22 = vld [vmem:[#allocation5 + $0x30] ss:$8 sps:$4 sm:$0xff]   ;;  %v167_v24 = vld [vmem:[%s1127_s1] sm:$0x3] }
  0x3f   :  { %v992_v23 = vld [vmem:[#allocation7 + $0x50] ss:$8 sps:$4 sm:$0xff]   ;;  %v752_v25 = vld [vmem:[#allocation7 + $0x64] ss:$8 sps:$4 sm:$0xff]   ;;  %v1000_v26 = vrot.slane %v167_v24, %v78_v21  ;;  %v61_v27 = vld [vmem:[#allocation2] sm:$0x1]  ;;  %v172_v36 = vrot.slane %v167_v24, %v74_v33 }
  0x40   :  { %129 = vmatpush1.bf16.msra.mxu0 %v751_v12  ;;  %v756_v29 = vld [vmem:[#allocation7 + $0x60] ss:$8 sps:$4 sm:$0xff]   ;;  %v758_v30 = vld [vmem:[#allocation7 + $0x74] ss:$8 sps:$4 sm:$0xff]   ;;  %v762_v31 = vld [vmem:[#allocation7 + $0x70] ss:$8 sps:$4 sm:$0xff]  }
  0x41   :  { %312 = vmatpush1.bf16.msra.mxu1 %v971_v6  ;;  %130 = vmatprep.subr.bf16.mxu0 %v754_v15  ;;  %v182_v28 = vpack.c.bf16 %v1000_v26, %v1000_v26  ;;  %v764_v32 = vld [vmem:[#allocation7 + $0x84] ss:$8 sps:$4 sm:$0xff]   ;;  %v766_v34 = vld [vmem:[#allocation7 + $0x80] ss:$8 sps:$4 sm:$0xff]   ;;  %v767_v35 = vld [vmem:[#allocation7 + $0x94] ss:$8 sps:$4 sm:$0xff]   ;;  %v181_v38 = vpack.c.bf16 %v172_v36, %v172_v36 }
  0x42   :  { %313 = vmatprep.subr.bf16.mxu1 %v974_v9  ;;  %v769_v37 = vld [vmem:[#allocation7 + $0x90] ss:$8 sps:$4 sm:$0xff]   ;;  %v70_v39 = vld [vmem:[%s1130_s4] sm:$0x3]  ;;  %s874_s4 = smov 104   ;;  %s875_s8 = smov 80  }
  0x43   :  { %707 = vmatprep.mubr.msk.bf16.mxu1 %vm303_vm0, %v182_v28  ;;  %v75_v40 = vrot.slane %v70_v39, %v74_v33  ;;  %v79_v46 = vrot.slane %v70_v39, %v78_v21  ;;  %s876_s9 = smov 56   ;;  %s877_s10 = smov 24   ;;  %vm486_vm2 = vcmask 457728   ;;  %vm537_vm3 = vcmask 654336  }
  0x44   :  { %131 = vmatpush1.bf16.msra.mxu0 %v757_v17  ;;  %s878_s11 = smov 48   ;;  %s879_s12 = smov 96   ;;  %vm582_vm4 = vcmask 64512   ;;  %vm632_vm5 = vcmask 195584   ;;  %vm622_vm6 = vcmask 392192   ;;  %vm635_vm7 = vcmask 588800  }
  0x45   :  { %314 = vmatpush1.bf16.msra.mxu1 %v977_v13  ;;  %132 = vmatprep.subr.bf16.mxu0 %v760_v19  ;;  %s880_s13 = smov 120   ;;  %s881_s14 = smov 72   ;;  %vm641_vm8 = vcmask 130048   ;;  %vm637_vm9 = vcmask 785408   ;;  %vm643_vm10 = vcmask 326656   ;;  %vm646_vm11 = vcmask 719872  }
  0x46   :  { %315 = vmatprep.subr.bf16.mxu1 %v980_v14  ;;  %s882_s15 = smov 32   ;;  %vm639_vm12 = vcmask 982016   ;;  %vm648_vm13 = vcmask 826368   ;;  %s884_s16 = smov [#allocation8]  }
  0x47   :  { %s668_s17 = sshll.u32 %s884_s16, 4  ;;  %s669_s17 = int_to_ptr.vmem [resolvable:$true] %s668_s17 }
  0x48   :  { %133 = vmatpush1.bf16.msra.mxu0 %v763_v22  ;;  %s840_s2 = scalar_lea.vmem %s669_s17, 64  ;;  %p845_p11 = scmp.lt.s32.totalorder %s669_s17, %s669_s17 }
  0x49   :  { %316 = vmatpush1.bf16.msra.mxu1 %v985_v18  ;;  %357 = vmatprep.subr.bf16.mxu0 %v957_v1  ;;  %p841_p10 = scmp.ne.s32.totalorder %s669_s17, %s840_s2  ;;  %p846_p12 = scmp.lt.s32.totalorder %s840_s2, %s840_s2 }
  0x4a   :  { %317 = vmatprep.subr.bf16.mxu1 %v988_v20 }
  0x4b   :  { %686 = vmatmul.mubr.msk.bf16.vlgmr.msra.gmra.mrb[0].mxu0 %vm122_vm1, %v61_v27  ;;  %p847_p13 = por %p846_p12, %p845_p11 }
  0x4c   :  { %358 = vmatpush1.bf16.msra.mxu0 %v959_v2 }
  0x4d   :  { %318 = vmatpush1.bf16.msra.mxu1 %v992_v23  ;;  %359 = vmatprep.subr.bf16.mxu0 %v962_v3  ;;  %p848_p0 = pnand %p847_p13, %p841_p10 }
  0x4e   :  { %319 = vmatprep.subr.bf16.mxu1 %v752_v25 }
  0x50   :  { %360 = vmatpush1.bf16.msra.mxu0 %v965_v4 }
  0x51   :  { %320 = vmatpush1.bf16.msra.mxu1 %v756_v29  ;;  %361 = vmatprep.subr.bf16.mxu0 %v968_v5 }
  0x52   :  { %321 = vmatprep.subr.bf16.mxu1 %v758_v30 }
  0x54   :  { %362 = vmatpush1.bf16.msra.mxu0 %v971_v6 }
  0x55   :  { %322 = vmatpush1.bf16.msra.mxu1 %v762_v31  ;;  %363 = vmatprep.subr.bf16.mxu0 %v974_v9 }
  0x56   :  { %323 = vmatprep.subr.bf16.mxu1 %v764_v32 }
  0x58   :  { %364 = vmatpush1.bf16.msra.mxu0 %v977_v13 }
  0x59   :  { %324 = vmatpush1.bf16.msra.mxu1 %v766_v34  ;;  %365 = vmatprep.subr.bf16.mxu0 %v980_v14 }
  0x5a   :  { %325 = vmatprep.subr.bf16.mxu1 %v767_v35 }
  0x5c   :  { %366 = vmatpush1.bf16.msra.mxu0 %v985_v18 }
  0x5d   :  { %326 = vmatpush1.bf16.msra.mxu1 %v769_v37  ;;  %367 = vmatprep.subr.bf16.mxu0 %v988_v20 }
  0x5e   :  { %407 = vmatprep.subr.bf16.mxu1 %v957_v1 }
  0x60   :  { %340 = vmatmul.mubr.bf16.vlgmr.msra.gmra.mrb[0].mxu1 %v181_v38  ;;  %368 = vmatpush1.bf16.msra.mxu0 %v992_v23 }
  0x61   :  { %408 = vmatpush1.bf16.msra.mxu1 %v959_v2  ;;  %369 = vmatprep.subr.bf16.mxu0 %v752_v25 }
  0x62   :  { %409 = vmatprep.subr.bf16.mxu1 %v962_v3 }
  0x64   :  { %370 = vmatpush1.bf16.msra.mxu0 %v756_v29 }
  0x65   :  { %410 = vmatpush1.bf16.msra.mxu1 %v965_v4  ;;  %371 = vmatprep.subr.bf16.mxu0 %v758_v30 }
  0x66   :  { %411 = vmatprep.subr.bf16.mxu1 %v968_v5 }
  0x68   :  { %372 = vmatpush1.bf16.msra.mxu0 %v762_v31 }
  0x69   :  { %412 = vmatpush1.bf16.msra.mxu1 %v971_v6  ;;  %373 = vmatprep.subr.bf16.mxu0 %v764_v32 }
  0x6a   :  { %413 = vmatprep.subr.bf16.mxu1 %v974_v9 }
  0x6c   :  { %374 = vmatpush1.bf16.msra.mxu0 %v766_v34 }
  0x6d   :  { %414 = vmatpush1.bf16.msra.mxu1 %v977_v13  ;;  %375 = vmatprep.subr.bf16.mxu0 %v767_v35 }
  0x6e   :  { %415 = vmatprep.subr.bf16.mxu1 %v980_v14 }
  0x70   :  { %376 = vmatpush1.bf16.msra.mxu0 %v769_v37 }
  0x71   :  { %416 = vmatpush1.bf16.msra.mxu1 %v985_v18 }
  0x72   :  { %417 = vmatprep.subr.bf16.mxu1 %v988_v20 }
  0x75   :  { %418 = vmatpush1.bf16.msra.mxu1 %v992_v23 }
  0x76   :  { %419 = vmatprep.subr.bf16.mxu1 %v752_v25 }
  0x79   :  { %420 = vmatpush1.bf16.msra.mxu1 %v756_v29 }
  0x7a   :  { %421 = vmatprep.subr.bf16.mxu1 %v758_v30 }
  0x7d   :  { %422 = vmatpush1.bf16.msra.mxu1 %v762_v31 }
  0x7e   :  { %423 = vmatprep.subr.bf16.mxu1 %v764_v32 }
  0x81   :  { %424 = vmatpush1.bf16.msra.mxu1 %v766_v34 }
  0x82   :  { %425 = vmatprep.subr.bf16.mxu1 %v767_v35 }
  0x85   :  { %426 = vmatpush1.bf16.msra.mxu1 %v769_v37 }
 0x11e   :  { %v160_v41 = vpop.f32.mrb[0].mxu0 }
 0x11f   :  { %v161_v42 = vadd.f32 %v160_v41, %v75_v40  ;;  %v162_v43 = vpop.f32.mrb[1].mxu0 }
 0x120   :  { %v164_v44 = vpop.f32.mrb[2].mxu0  ;;  %v163_v47 = vadd.f32 %v162_v43, %v79_v46 }
 0x121   :  { %v165_v45 = vpop.f32.mrb[3].mxu0  ;;  %v179_v48 = vadd.f32 %v172_v36, %v161_v42 }
 0x122   :  { %v180_v49 = vadd.f32 %v1000_v26, %v163_v47 }
 0x133   :  { %v341_v50 = vpop.f32.mrb[0].mxu1 }
 0x134   :  { %v348_v51 = vadd.f32 %v341_v50, %v179_v48  ;;  %v343_v52 = vpop.f32.mrb[1].mxu1 }
 0x135   :  { %v349_v53 = vadd.f32 %v343_v52, %v180_v49  ;;  %v345_v54 = vpop.f32.mrb[2].mxu1 }
 0x136   :  { %v346_v55 = vpop.f32.mrb[3].mxu1  ;;  %v352_v57 = vpack.c.bf16 %v348_v51, %v348_v51  ;;  %v350_v58 = vadd.f32 %v348_v51, %v161_v42 }
 0x137   :  { %v353_v56 = vpack.c.bf16 %v349_v53, %v349_v53  ;;  %v351_v60 = vadd.f32 %v349_v53, %v163_v47 }
 0x139   :  { %708 = vmatprep.mubr.msk.bf16.mxu0 %vm303_vm0, %v353_v56 }
 0x13a   :  { %390 = vmatmul.mubr.bf16.vlgmr.msra.gmra.mrb[4].mxu0 %v352_v57 }
 0x20d   :  { %v391_v59 = vpop.f32.mrb[4].mxu0 }
 0x20e   :  { %v398_v61 = vadd.f32 %v391_v59, %v350_v58  ;;  %v393_v62 = vpop.f32.mrb[5].mxu0 }
 0x20f   :  { %v399_v63 = vadd.f32 %v393_v62, %v351_v60  ;;  %v395_v0 = vpop.f32.mrb[6].mxu0 }
 0x210   :  { %v396_v1 = vpop.f32.mrb[7].mxu0  ;;  %v402_v3 = vpack.c.bf16 %v398_v61, %v398_v61  ;;  %v400_v4 = vadd.f32 %v398_v61, %v161_v42 }
 0x211   :  { %v403_v2 = vpack.c.bf16 %v399_v63, %v399_v63  ;;  %v401_v6 = vadd.f32 %v399_v63, %v163_v47 }
 0x213   :  { %709 = vmatprep.mubr.msk.bf16.mxu1 %vm303_vm0, %v403_v2 }
 0x214   :  { %440 = vmatmul.mubr.bf16.vlgmr.msra.gmra.mrb[4].mxu1 %v402_v3 }
 0x2e7   :  { %v441_v5 = vpop.f32.mrb[4].mxu1 }
 0x2e8   :  { %v1040_v7 = vadd.f32 %v441_v5, %v400_v4  ;;  %v443_v8 = vpop.f32.mrb[5].mxu1 }
 0x2e9   :  { %v1042_v9 = vadd.f32 %v443_v8, %v401_v6  ;;  %v445_v10 = vpop.f32.mrb[6].mxu1 }
 0x2ea   :  { %v446_v11 = vpop.f32.mrb[7].mxu1  ;;  %v450_v12 = vmul.f32 %v1040_v7, %v1040_v7 }
 0x2ec   :  { %452 = vrot.lane.b32.xlu0 %v450_v12, %s874_s4 }
 0x2f0   :  { %456 = vrot.lane.b32.xlu0 %v450_v12, %s875_s8 }
 0x2f4   :  { %473 = vrot.lane.b32.xlu0 %v1040_v7, %s876_s9 }
 0x35e   :  { %v453_v13 = vpop.permute.xlu0 %452 }
 0x35f   :  { %v455_v14 = vadd.f32 %v453_v13, %v450_v12 }
 0x362   :  { %v457_v15 = vpop.permute.xlu0 %456 }
 0x363   :  { %v459_v16 = vadd.f32 %v457_v15, %v455_v14 }
 0x365   :  { %v460_v17 = vmax.f32 %v459_v16, 1e-24 }
 0x366   :  { %v474_v21 = vpop.permute.xlu0 %473 }
 0x367   :  { %770 = vrsqrt.f32 %v460_v17 }
 0x371   :  { %v771_v18 = vpop.eup %770 }
 0x372   :  { %464 = vrot.lane.b32.xlu1 %v771_v18, %s877_s10  ;;  %v1067_v28 = vmul.f32 %v771_v18, %v1040_v7 }
 0x374   :  { %v476_v30 = vmul.f32 %v474_v21, %v1067_v28 }
 0x376   :  { %468 = vrot.lane.b32.xlu1 %v771_v18, %s878_s11 }
 0x37a   :  { %484 = vrot.lane.b32.xlu1 %v1042_v9, %s876_s9 }
 0x3e4   :  { %v465_v19 = vpop.permute.xlu1 %464 }
 0x3e5   :  { %v1053_v20 = vmul.f32 %v465_v19, %v1040_v7 }
 0x3e7   :  { %v477_v22 = vmul.f32 %v474_v21, %v1053_v20 }
 0x3e8   :  { %v469_v23 = vpop.permute.xlu1 %468 }
 0x3e9   :  { %479 = vrot.lane.b32.xlu0 %v477_v22, %s874_s4  ;;  %v1058_v24 = vmul.f32 %v469_v23, %v1040_v7 }
 0x3ec   :  { %v485_v25 = vpop.permute.xlu1 %484 }
 0x3ed   :  { %v487_v26 = vsel %vm486_vm2, %v474_v21, %v485_v25  ;;  %502 = vrot.lane.b32.xlu0 %v1053_v20, %s874_s4 }
 0x3ee   :  { %v489_v27 = vmul.f32 %v487_v26, %v1058_v24 }
 0x3f0   :  { %491 = vrot.lane.b32.xlu1 %v489_v27, %s875_s8 }
 0x3f4   :  { %512 = vrot.lane.b32.xlu1 %v1058_v24, %s875_s8 }
 0x45b   :  { %v480_v29 = vpop.permute.xlu0 %479 }
 0x45c   :  { %v482_v31 = vadd.f32 %v480_v29, %v476_v30 }
 0x45f   :  { %v503_v34 = vpop.permute.xlu0 %502 }
 0x462   :  { %v492_v32 = vpop.permute.xlu1 %491 }
 0x463   :  { %v494_v33 = vadd.f32 %v492_v32, %v482_v31 }
 0x465   :  { %v505_v35 = vmul.f32 %v503_v34, %v494_v33  ;;  %v495_v38 = vmul.f32 %v494_v33, %v1067_v28 }
 0x466   :  { %v513_v36 = vpop.permute.xlu1 %512 }
 0x467   :  { %v515_v37 = vmul.f32 %v513_v36, %v494_v33  ;;  %507 = vrot.lane.b32.xlu0 %v505_v35, %s879_s12 }
 0x469   :  { %517 = vrot.lane.b32.xlu1 %v515_v37, %s880_s13 }
 0x46b   :  { %497 = vrot.lane.b32.xlu0 %v495_v38, %s881_s14 }
 0x4d9   :  { %v508_v39 = vpop.permute.xlu0 %507 }
 0x4da   :  { %v510_v40 = vsub.f32 %v1040_v7, %v508_v39 }
 0x4db   :  { %v518_v41 = vpop.permute.xlu1 %517 }
 0x4dc   :  { %v523_v42 = vmul.f32 %v510_v40, %v510_v40  ;;  %v520_v43 = vsub.f32 %v1040_v7, %v518_v41  ;;  %v521_v44 = vsub.f32 %v1042_v9, %v518_v41 }
 0x4dd   :  { %v498_v47 = vpop.permute.xlu0 %497 }
 0x4de   :  { %v529_v45 = vmul.f32 %v520_v43, %v520_v43  ;;  %525 = vrot.lane.b32.xlu1 %v523_v42, %s874_s4  ;;  %v530_v46 = vmul.f32 %v521_v44, %v521_v44  ;;  %v500_v48 = vsub.f32 %v1040_v7, %v498_v47 }
 0x4e0   :  { %533 = vrot.lane.b32.xlu0 %v529_v45, %s875_s8  ;;  %v522_v50 = vmul.f32 %v500_v48, %v500_v48 }
 0x4e2   :  { %535 = vrot.lane.b32.xlu1 %v530_v46, %s875_s8 }
 0x550   :  { %v526_v49 = vpop.permute.xlu1 %525 }
 0x551   :  { %v528_v51 = vadd.f32 %v526_v49, %v522_v50 }
 0x552   :  { %v534_v52 = vpop.permute.xlu0 %533 }
 0x554   :  { %v536_v53 = vpop.permute.xlu1 %535 }
 0x555   :  { %v538_v54 = vsel %vm537_vm3, %v534_v52, %v536_v53 }
 0x556   :  { %v540_v55 = vadd.f32 %v538_v54, %v528_v51 }
 0x558   :  { %v541_v56 = vmax.f32 %v540_v55, 1e-24 }
 0x55a   :  { %772 = vrsqrt.f32 %v541_v56 }
 0x564   :  { %v773_v57 = vpop.eup %772 }
 0x565   :  { %545 = vrot.lane.b32.xlu1 %v773_v57, %s877_s10  ;;  %549 = vrot.lane.b32.xlu0 %v773_v57, %s878_s11  ;;  %v543_v63 = vmul.f32 %v773_v57, %v500_v48 }
 0x5d7   :  { %v550_v58 = vpop.permute.xlu0 %549  ;;  %v546_v61 = vpop.permute.xlu1 %545 }
 0x5d8   :  { %v552_v59 = vmul.f32 %v550_v58, %v520_v43  ;;  %v553_v60 = vmul.f32 %v550_v58, %v521_v44  ;;  %v1084_v62 = vmul.f32 %v546_v61, %v510_v40 }
 0x5da   :  { %580 = vrot.lane.b32.xlu1 %v553_v60, %s870_s29  ;;  %578 = vrot.lane.b32.xlu0 %v552_v59, %s870_s29  ;;  %s883_s29 = smov 64  }
 0x5de   :  { %564 = vrot.lane.b32.xlu0 %v1084_v62, %s875_s8  ;;  %595 = vrot.lane.b32.xlu1 %v543_v63, %s875_s8 }
 0x5e2   :  { %574 = vrot.lane.b32.xlu0 %v543_v63, %s874_s4  ;;  %558 = vrot.lane.b32.xlu1 %v553_v60, %s882_s15 }
 0x5e6   :  { %556 = vrot.lane.b32.xlu0 %v552_v59, %s882_s15 }
 0x5ea   :  { %591 = vrot.lane.b32.xlu0 %v1084_v62, %s882_s15 }
 0x64c   :  { %v581_v0 = vpop.permute.xlu1 %580  ;;  %v579_v1 = vpop.permute.xlu0 %578 }
 0x64d   :  { %v583_v2 = vsel %vm582_vm4, %v579_v1, %v581_v0 }
 0x64e   :  { %v585_v3 = vmul.f32 %v583_v2, %v1067_v28 }
 0x650   :  { %v565_v4 = vpop.permute.xlu0 %564  ;;  %587 = vrot.lane.b32.xlu1 %v585_v3, %s878_s11  ;;  %v596_v5 = vpop.permute.xlu1 %595 }
 0x651   :  { %v567_v6 = vmul.f32 %v565_v4, %v1058_v24  ;;  %v598_v7 = vmul.f32 %v596_v5, %v1053_v20  ;;  %v633_v27 = vsel %vm632_vm5, %v1067_v28, %v596_v5 }
 0x653   :  { %600 = vrot.lane.b32.xlu0 %v598_v7, %s874_s4 }
 0x654   :  { %569 = vrot.lane.b32.xlu1 %v567_v6, %s874_s4  ;;  %v575_v8 = vpop.permute.xlu0 %574  ;;  %v559_v10 = vpop.permute.xlu1 %558 }
 0x655   :  { %v577_v18 = vmul.f32 %v575_v8, %v1058_v24 }
 0x657   :  { %615 = vrot.lane.b32.xlu0 %v1058_v24, %s879_s12 }
 0x658   :  { %618 = vrot.lane.b32.xlu1 %v552_v59, %s878_s11  ;;  %v557_v11 = vpop.permute.xlu0 %556 }
 0x659   :  { %v560_v12 = vsel %vm303_vm0, %v557_v11, %v559_v10 }
 0x65a   :  { %v562_v14 = vmul.f32 %v560_v12, %v1053_v20 }
 0x65b   :  { %620 = vrot.lane.b32.xlu0 %v553_v60, %s878_s11 }
 0x65c   :  { %v592_v17 = vpop.permute.xlu0 %591 }
 0x65d   :  { %v594_v22 = vmul.f32 %v592_v17, %v1067_v28 }
 0x65f   :  { %608 = vrot.lane.b32.xlu0 %v1053_v20, %s878_s11 }
 0x663   :  { %629 = vrot.lane.b32.xlu0 %v1042_v9, %s881_s14 }
 0x6c2   :  { %v588_v13 = vpop.permute.xlu1 %587 }
 0x6c3   :  { %v590_v19 = vsub.f32 %v577_v18, %v588_v13 }
 0x6c5   :  { %v601_v21 = vpop.permute.xlu0 %600 }
 0x6c6   :  { %v570_v15 = vpop.permute.xlu1 %569  ;;  %v603_v9 = vsub.f32 %v594_v22, %v601_v21 }
 0x6c7   :  { %v572_v16 = vsub.f32 %v562_v14, %v570_v15 }
 0x6c9   :  { %605 = vrot.lane.b32.xlu1 %v572_v16, %s877_s10  ;;  %v616_v23 = vpop.permute.xlu0 %615 }
 0x6ca   :  { %v619_v25 = vpop.permute.xlu1 %618 }
 0x6cd   :  { %612 = vrot.lane.b32.xlu1 %v590_v19, %s881_s14  ;;  %v621_v26 = vpop.permute.xlu0 %620 }
 0x6ce   :  { %v623_v33 = vsel %vm622_vm6, %v619_v25, %v621_v26 }
 0x6d1   :  { %626 = vrot.lane.b32.xlu1 %v603_v9, %s883_s29  ;;  %v609_v29 = vpop.permute.xlu0 %608 }
 0x6d5   :  { %v630_v37 = vpop.permute.xlu0 %629 }
 0x73b   :  { %v606_v20 = vpop.permute.xlu1 %605 }
 0x73c   :  { %v634_v24 = vsel %vm622_vm6, %v633_v27, %v606_v20 }
 0x73d   :  { %v636_v31 = vsel %vm635_vm7, %v634_v24, %v609_v29 }
 0x73e   :  { %v638_v34 = vsel %vm637_vm9, %v636_v31, %v1084_v62 }
 0x73f   :  { %v613_v30 = vpop.permute.xlu1 %612 }
 0x740   :  { %v642_v32 = vsel %vm641_vm8, %v613_v30, %v616_v23  ;;  %v640_v39 = vsel %vm639_vm12, %v638_v34, %v613_v30 }
 0x741   :  { %v644_v35 = vsel %vm643_vm10, %v642_v32, %v623_v33 }
 0x743   :  { %v627_v36 = vpop.permute.xlu1 %626 }
 0x744   :  { %v645_v28 = vsel %vm122_vm1, %v644_v35, %v627_v36 }
 0x745   :  { %v647_v38 = vsel %vm646_vm11, %v645_v28, %v630_v37 }
 0x746   :  { %v649_v40 = vsel %vm648_vm13, %v647_v38, 0.0 }
 0x747   :  { %v652_v41 = vcombine.low %v640_v39, %v649_v40 }
 0x749   :  { %710 = vst.sshfl [vmem:[#allocation8] sm:$0x33 pattern:$0x76325410] %v652_v41 }
 0x74a   :  { %851 = shalt.err (!%p848_p0)
}
 0x74b   :  { %s852_s20 = scalar_lea.hbm %s1131_s5, 64 }
 0x74c   :  { %p853_p1 = scmp.ne.s32.totalorder %s1131_s5, %s852_s20  ;;  %p856_p2 = scmp.lt.u32.totalorder %s852_s20, %s1131_s5 }
 0x74e   :  { %p858_p3 = pnand %p856_p2, %p853_p1 }
 0x750   :  { %861 = shalt.err (!%p858_p3)
}
 0x751   :  { %671 = dma.vmem_to_hbm [thread:$0]  %s669_s17, 64, %s1131_s5, [#allocation4]  }
 0x752   :  { %866 = dma.done.wait [#allocation4], 64  }
 0x753   :  { %867 = vsyncadd [#allocation4], 4294967232 }
 0x754   :  { %675 = vsyncpa [#allocation3], 1 }
 0x755   :  { %676 = vsyncpa [#allocation6], 1 }
 0x756   :  { %677 = vsyncpa [#allocation4], 1 }

</bundles_post_ra>
